<compile_context>
chip_gen: v7x
topology: tpu7x:2x2x1
jax: 0.10.0
libtpu: 0.0.40
codegen_flags: <defaults>
</compile_context>

<pallas_src>
import functools

import jax
import jax.numpy as jnp
from jax.experimental import pallas as pl
from jax.experimental.pallas import tpu as pltpu


_INV_SQRT2 = 0.7071067811865475


# --------------------------------------------------------------------------
# In-kernel math helpers
# --------------------------------------------------------------------------
def _gelu_exact(x):
    """Exact-erf GELU (matches PyTorch nn.GELU() default).

    erf via Abramowitz & Stegun 7.1.26 (|err| <= 1.5e-7).  The 1/(1+p|z|)
    term uses the EUP approximate reciprocal + one Newton step and exp also
    runs on the EUP, so most of the transcendental work leaves the VALU slot.
    """
    z = x * _INV_SQRT2
    az = jnp.abs(z)
    d = 1.0 + 0.3275911 * az
    t = pl.reciprocal(d, approx=True)
    t = t * (2.0 - d * t)                       # one Newton step
    poly = ((((1.061405429 * t - 1.453152027) * t + 1.421413741) * t
             - 0.284496736) * t + 0.254829592) * t
    e = 1.0 - poly * jnp.exp(-az * az)          # exp -> EUP
    erf = jnp.where(z < 0.0, -e, e)
    return 0.5 * x * (1.0 + erf)


# --------------------------------------------------------------------------
# Fused kernel: conv1 || conv2 (k=3, pad=1) + GELU + 1x1 projection
# --------------------------------------------------------------------------
def _mixed_conv_ff_kernel(x_ref, xl_ref, xr_ref, w_ref, b12_ref, wp_ref,
                          bp_ref, o_ref, *, use_im2col):
    """One (batch, sequence-tile) step.

    x_ref  : (TN, E)        f32  rows of this tile
    xl_ref : (8,  E)        f32  8-row block just left of the tile (clamped)
    xr_ref : (8,  E)        f32  8-row block just right of the tile (clamped)
    w_ref  : (3E, Hc_pad)   bf16 conv1||conv2 weights, taps stacked along K
    b12_ref: (1,  Hc_pad)   f32  conv1||conv2 bias
    wp_ref : (Hc_pad, E_pad) bf16 1x1 projection weight
    bp_ref : (1,  E_pad)    f32  projection bias
    o_ref  : (TN, E_pad)    f32  output tile (lane-dense)
    """
    j = pl.program_id(1)
    n_j = pl.num_programs(1)
    TN, E = x_ref.shape

    xt = x_ref[...].astype(jnp.bfloat16)

    # Sequence halo rows; masked to zero at the sequence ends (== Conv1d pad=1).
    lmask = (j > 0).astype(jnp.bfloat16)
    rmask = (j < n_j - 1).astype(jnp.bfloat16)
    left = xl_ref[7:8, :].astype(jnp.bfloat16) * lmask      # x[tile_start - 1]
    right = xr_ref[0:1, :].astype(jnp.bfloat16) * rmask     # x[tile_end]
    xw = jnp.concatenate([left, xt, right], axis=0)         # (TN + 2, E)

    if use_im2col:
        # Small E: merge the 3 taps into one matmul with K = 3E (fills MXU K).
        lhs = jnp.concatenate([xw[0:TN], xw[1:TN + 1], xw[2:TN + 2]], axis=1)
        acc = jnp.dot(lhs, w_ref[...], preferred_element_type=jnp.float32)
    else:
        w_all = w_ref[...]
        acc = jnp.dot(xw[0:TN], w_all[0:E],
                      preferred_element_type=jnp.float32)
        acc += jnp.dot(xw[1:TN + 1], w_all[E:2 * E],
                       preferred_element_type=jnp.float32)
        acc += jnp.dot(xw[2:TN + 2], w_all[2 * E:3 * E],
                       preferred_element_type=jnp.float32)

    acc = acc + b12_ref[...]                                 # (TN, Hc_pad) f32
    h = _gelu_exact(acc).astype(jnp.bfloat16)                # GELU then "concat"

    out = jnp.dot(h, wp_ref[...], preferred_element_type=jnp.float32)
    out = out + bp_ref[...]
    o_ref[...] = out.astype(o_ref.dtype)


# --------------------------------------------------------------------------
# Wrapper: tiling, weight repacking, specs
# --------------------------------------------------------------------------
def _round_up(v, m):
    return ((v + m - 1) // m) * m


def mixed_conv_ff_forward(x, params, *, max_tile_n=512,
                          vmem_budget_bytes=40 * 1024 * 1024):
    """x: (B, N, E) float32; params hold PyTorch-shaped Conv1d weights."""
    B, N, E = x.shape
    H = params['conv1_b'].shape[0]             # expansion * E
    Hc = 2 * H                                 # concat width
    Hc_pad = _round_up(Hc, 128)
    E_pad = _round_up(E, 128)
    use_im2col = E < 128

    # --- sequence tile size: multiple of 8, bounded by an explicit budget ---
    def step_bytes(tn):
        act = tn * E * 4 + 2 * 8 * E * 4 + tn * E_pad * 4        # x, halos, out
        wgt = (3 * E * Hc_pad + Hc_pad * E_pad) * 2 + (Hc_pad + E_pad) * 4
        live = tn * Hc_pad * 6 + tn * 3 * E * 2                  # acc f32 + h bf16 + lhs
        return 2 * (act + wgt) + live                            # double-buffered

    TN = min(_round_up(N, 8), max(8, max_tile_n))
    while TN > 8 and step_bytes(TN) > vmem_budget_bytes:
        TN = max(8, (TN // 2 + 7) // 8 * 8)

    N_pad = _round_up(N, TN)
    nN = N_pad // TN
    tpb = TN // 8                   # 8-row blocks per tile
    nb8 = N_pad // 8                # total 8-row blocks along the sequence

    xs = x.astype(jnp.float32)
    if N_pad != N:                  # tail-only pad (none for N % TN == 0)
        xs = jnp.pad(xs, ((0, 0), (0, N_pad - N), (0, 0)))

    # --- weight repacking (cast to bf16 once; biases stay f32) --------------
    # Conv1d weight (Cout, Cin, 3) -> (3, E, Cout); conv1 || conv2 on Cout.
    w_cat = jnp.concatenate(
        [jnp.transpose(params['conv1_w'], (2, 1, 0)),
         jnp.transpose(params['conv2_w'], (2, 1, 0))], axis=2)   # (3, E, 2H)
    w_cat = jnp.pad(w_cat, ((0, 0), (0, 0), (0, Hc_pad - Hc)))
    w_cat = w_cat.reshape(3 * E, Hc_pad).astype(jnp.bfloat16)    # tap-major K

    b12 = jnp.concatenate([params['conv1_b'], params['conv2_b']])
    b12 = jnp.pad(b12, (0, Hc_pad - Hc)).reshape(1, Hc_pad).astype(jnp.float32)

    wp = jnp.transpose(params['proj_w'][:, :, 0], (1, 0))        # (2H, E)
    wp = jnp.pad(wp, ((0, Hc_pad - Hc), (0, E_pad - E))).astype(jnp.bfloat16)
    bp = jnp.pad(params['proj_b'],
                 (0, E_pad - E)).reshape(1, E_pad).astype(jnp.float32)

    # --- specs ---------------------------------------------------------------
    in_specs = [
        # main tile (batch dim squeezed -> 2-D ref in the kernel)
        pl.BlockSpec((None, TN, E), lambda b, j: (b, j, 0)),
        # aligned 8-row neighbor blocks for the k=3 halo (clamped at the ends)
        pl.BlockSpec((None, 8, E),
                     lambda b, j: (b, jnp.maximum(j * tpb - 1, 0), 0)),
        pl.BlockSpec((None, 8, E),
                     lambda b, j: (b, jnp.minimum((j + 1) * tpb, nb8 - 1), 0)),
        # constant weights / biases
        pl.BlockSpec((3 * E, Hc_pad), lambda b, j: (0, 0)),
        pl.BlockSpec((1, Hc_pad), lambda b, j: (0, 0)),
        pl.BlockSpec((Hc_pad, E_pad), lambda b, j: (0, 0)),
        pl.BlockSpec((1, E_pad), lambda b, j: (0, 0)),
    ]
    out_spec = pl.BlockSpec((None, TN, E_pad), lambda b, j: (b, j, 0))

    flops = 2 * B * N_pad * (3 * E * Hc + Hc * E)
    transcendentals = 2 * B * N_pad * Hc
    bytes_accessed = (B * N_pad * E * 4 + B * N_pad * E_pad * 4
                      + (3 * E * Hc_pad + Hc_pad * E_pad) * 2
                      + (Hc_pad + E_pad) * 4)

    vmem_limit = int(min(56 * 1024 * 1024,
                         max(32 * 1024 * 1024, 2 * step_bytes(TN))))

    out = pl.pallas_call(
        functools.partial(_mixed_conv_ff_kernel, use_im2col=use_im2col),
        out_shape=jax.ShapeDtypeStruct((B, N_pad, E_pad), jnp.float32),
        grid=(B, nN),
        in_specs=in_specs,
        out_specs=out_spec,
        compiler_params=pltpu.CompilerParams(
            dimension_semantics=("parallel", "parallel"),
            vmem_limit_bytes=vmem_limit),
        cost_estimate=pl.CostEstimate(flops=flops,
                                      transcendentals=transcendentals,
                                      bytes_accessed=bytes_accessed),
    )(xs, xs, xs, w_cat, b12, wp, bp)

    return out[:, :N, :E]


# --------------------------------------------------------------------------
# Pure-JAX reference (PyTorch-faithful, correctness check only)
# --------------------------------------------------------------------------
def reference_forward(x, p):
    B, N, E = x.shape

    def gelu(v):
        return 0.5 * v * (1.0 + jax.scipy.special.erf(v / jnp.sqrt(2.0)))

    def conv1d_k3(xn, w, b):          # xn (B,N,E), w (Cout,E,3) -> (B,N,Cout)
        xpad = jnp.pad(xn, ((0, 0), (1, 1), (0, 0)))
        out = jnp.broadcast_to(b[None, None, :], (B, N, w.shape[0]))
        for k in range(3):
            out = out + jnp.einsum('bne,oe->bno', xpad[:, k:k + N, :],
                                   w[:, :, k],
                                   precision=jax.lax.Precision.HIGHEST)
        return out

    x1 = gelu(conv1d_k3(x, p['conv1_w'], p['conv1_b']))
    x2 = gelu(conv1d_k3(x, p['conv2_w'], p['conv2_b']))
    cat = jnp.concatenate([x1, x2], axis=-1)             # (B, N, 2H)
    out = jnp.einsum('bnc,ec->bne', cat, p['proj_w'][:, :, 0],
                     precision=jax.lax.Precision.HIGHEST)
    return out + p['proj_b'][None, None, :]              # dropout = identity


# --------------------------------------------------------------------------
if __name__ == "__main__":
    key = jax.random.PRNGKey(0)
    ks = jax.random.split(key, 8)

    B, N, E, expansion = 2, 8, 32, 3
    H = expansion * E

    x = jax.random.normal(ks[0], (B, N, E), jnp.float32)
    params = dict(
        conv1_w=0.1 * jax.random.normal(ks[1], (H, E, 3), jnp.float32),
        conv1_b=0.1 * jax.random.normal(ks[2], (H,), jnp.float32),
        conv2_w=0.1 * jax.random.normal(ks[3], (H, E, 3), jnp.float32),
        conv2_b=0.1 * jax.random.normal(ks[4], (H,), jnp.float32),
        proj_w=0.1 * jax.random.normal(ks[5], (E, 2 * H, 1), jnp.float32),
        proj_b=0.1 * jax.random.normal(ks[6], (E,), jnp.float32),
    )

    out = jax.block_until_ready(jax.jit(mixed_conv_ff_forward)(x, params))
    ref = jax.block_until_ready(reference_forward(x, params))

    assert out.shape == (B, N, E), out.shape
    # bf16 MXU operands (f32 accumulation) -> ~1e-2 scale tolerance vs f32 ref.
    if not bool(jnp.allclose(out, ref, atol=1.5e-2, rtol=1.5e-2)):
        raise AssertionError(
            f"mismatch vs reference: max abs diff = "
            f"{float(jnp.max(jnp.abs(out - ref)))}")
    print("KERNEL_OK")
</pallas_src>

<mosaic_0001>
module attributes {stable_mosaic.version = 11 : i64} {
  func.func @_mixed_conv_ff_kernel(%arg0: i32, %arg1: i32, %arg2: memref<1x8x32xf32, #tpu.memory_space<vmem>>, %arg3: memref<1x8x32xf32, #tpu.memory_space<vmem>>, %arg4: memref<1x8x32xf32, #tpu.memory_space<vmem>>, %arg5: memref<96x256xbf16, #tpu.memory_space<vmem>>, %arg6: memref<1x256xf32, #tpu.memory_space<vmem>>, %arg7: memref<256x128xbf16, #tpu.memory_space<vmem>>, %arg8: memref<1x128xf32, #tpu.memory_space<vmem>>, %arg9: memref<1x8x128xf32, #tpu.memory_space<vmem>>) attributes {dimension_semantics = [#tpu.dimension_semantics<parallel>, #tpu.dimension_semantics<parallel>], iteration_bounds = array<i64: 2, 1>, scalar_prefetch = 0 : i64, scratch_operands = 0 : i64, tpu.core_type = #tpu.core_type<tc>, window_params = [{transform_indices = @transform_0, window_bounds = array<i64: 1, 8, 32>}, {transform_indices = @transform_1, window_bounds = array<i64: 1, 8, 32>}, {transform_indices = @transform_2, window_bounds = array<i64: 1, 8, 32>}, {pipeline_mode = #tpu.pipeline_mode<synchronous>, transform_indices = @transform_3, window_bounds = array<i64: 96, 256>}, {pipeline_mode = #tpu.pipeline_mode<synchronous>, transform_indices = @transform_4, window_bounds = array<i64: 1, 256>}, {pipeline_mode = #tpu.pipeline_mode<synchronous>, transform_indices = @transform_5, window_bounds = array<i64: 256, 128>}, {pipeline_mode = #tpu.pipeline_mode<synchronous>, transform_indices = @transform_6, window_bounds = array<i64: 1, 128>}, {transform_indices = @transform_7, window_bounds = array<i64: 1, 8, 128>}]} {
    %c0 = arith.constant 0 : index
    %c0_0 = arith.constant 0 : index
    %c0_1 = arith.constant 0 : index
    %0 = vector.load %arg2[%c0, %c0_0, %c0_1] : memref<1x8x32xf32, #tpu.memory_space<vmem>>, vector<1x8x32xf32>
    %1 = vector.shape_cast %0 : vector<1x8x32xf32> to vector<8x32xf32>
    %2 = arith.truncf %1 : vector<8x32xf32> to vector<8x32xbf16>
    %c0_i32 = arith.constant 0 : i32
    %3 = arith.cmpi sgt, %arg1, %c0_i32 : i32
    %4 = arith.extui %3 : i1 to i32
    %5 = arith.sitofp %4 : i32 to f32
    %6 = arith.truncf %5 : f32 to bf16
    %c0_i32_2 = arith.constant 0 : i32
    %7 = arith.cmpi slt, %arg1, %c0_i32_2 : i32
    %8 = arith.extui %7 : i1 to i32
    %9 = arith.sitofp %8 : i32 to f32
    %10 = arith.truncf %9 : f32 to bf16
    %c0_3 = arith.constant 0 : index
    %c7 = arith.constant 7 : index
    %c0_4 = arith.constant 0 : index
    %11 = vector.load %arg3[%c0_3, %c7, %c0_4] : memref<1x8x32xf32, #tpu.memory_space<vmem>>, vector<1x1x32xf32>
    %12 = vector.shape_cast %11 : vector<1x1x32xf32> to vector<1x32xf32>
    %13 = arith.truncf %12 : vector<1x32xf32> to vector<1x32xbf16>
    %14 = vector.broadcast %6 : bf16 to vector<1x32xbf16>
    %15 = arith.mulf %13, %14 : vector<1x32xbf16>
    %c0_5 = arith.constant 0 : index
    %c0_6 = arith.constant 0 : index
    %c0_7 = arith.constant 0 : index
    %16 = vector.load %arg4[%c0_5, %c0_6, %c0_7] : memref<1x8x32xf32, #tpu.memory_space<vmem>>, vector<1x1x32xf32>
    %17 = vector.shape_cast %16 : vector<1x1x32xf32> to vector<1x32xf32>
    %18 = arith.truncf %17 : vector<1x32xf32> to vector<1x32xbf16>
    %19 = vector.broadcast %10 : bf16 to vector<1x32xbf16>
    %20 = arith.mulf %18, %19 : vector<1x32xbf16>
    %21 = tpu.concatenate %15, %2, %20 in 0 : vector<1x32xbf16>, vector<8x32xbf16>, vector<1x32xbf16> -> vector<10x32xbf16>
    %22 = vector.extract_strided_slice %21 {offsets = [0, 0], sizes = [8, 32], strides = [1, 1]} : vector<10x32xbf16> to vector<8x32xbf16>
    %23 = vector.extract_strided_slice %21 {offsets = [1, 0], sizes = [8, 32], strides = [1, 1]} : vector<10x32xbf16> to vector<8x32xbf16>
    %24 = vector.extract_strided_slice %21 {offsets = [2, 0], sizes = [8, 32], strides = [1, 1]} : vector<10x32xbf16> to vector<8x32xbf16>
    %25 = tpu.concatenate %22, %23, %24 in 1 : vector<8x32xbf16>, vector<8x32xbf16>, vector<8x32xbf16> -> vector<8x96xbf16>
    %c0_8 = arith.constant 0 : index
    %c0_9 = arith.constant 0 : index
    %26 = vector.load %arg5[%c0_8, %c0_9] : memref<96x256xbf16, #tpu.memory_space<vmem>>, vector<96x256xbf16>
    %cst = arith.constant dense<0.000000e+00> : vector<8x256xf32>
    %27 = tpu.matmul %25, %26, %cst {dimension_numbers = #tpu.dot_dimension_numbers<[1], [0], [0], [1], [0, 0, 1, 1], [], []>} : vector<8x96xbf16>, vector<96x256xbf16>, vector<8x256xf32> -> vector<8x256xf32>
    %c0_10 = arith.constant 0 : index
    %c0_11 = arith.constant 0 : index
    %28 = vector.load %arg6[%c0_10, %c0_11] : memref<1x256xf32, #tpu.memory_space<vmem>>, vector<1x256xf32>
    %29 = vector.broadcast %28 : vector<1x256xf32> to vector<8x256xf32>
    %30 = arith.addf %27, %29 : vector<8x256xf32>
    %cst_12 = arith.constant 0.707106769 : f32
    %31 = vector.broadcast %cst_12 : f32 to vector<8x256xf32>
    %32 = arith.mulf %30, %31 : vector<8x256xf32>
    %33 = math.absf %32 : vector<8x256xf32>
    %cst_13 = arith.constant 0.327591091 : f32
    %34 = vector.broadcast %cst_13 : f32 to vector<8x256xf32>
    %35 = arith.mulf %34, %33 : vector<8x256xf32>
    %cst_14 = arith.constant 1.000000e+00 : f32
    %36 = vector.broadcast %cst_14 : f32 to vector<8x256xf32>
    %37 = arith.addf %36, %35 : vector<8x256xf32>
    %38 = tpu.reciprocal %37 {approx = true} : vector<8x256xf32> -> vector<8x256xf32>
    %39 = arith.mulf %37, %38 : vector<8x256xf32>
    %cst_15 = arith.constant 2.000000e+00 : f32
    %40 = vector.broadcast %cst_15 : f32 to vector<8x256xf32>
    %41 = arith.subf %40, %39 : vector<8x256xf32>
    %42 = arith.mulf %38, %41 : vector<8x256xf32>
    %cst_16 = arith.constant 1.06140542 : f32
    %43 = vector.broadcast %cst_16 : f32 to vector<8x256xf32>
    %44 = arith.mulf %43, %42 : vector<8x256xf32>
    %cst_17 = arith.constant 1.45315206 : f32
    %45 = vector.broadcast %cst_17 : f32 to vector<8x256xf32>
    %46 = arith.subf %44, %45 : vector<8x256xf32>
    %47 = arith.mulf %46, %42 : vector<8x256xf32>
    %cst_18 = arith.constant 1.42141378 : f32
    %48 = vector.broadcast %cst_18 : f32 to vector<8x256xf32>
    %49 = arith.addf %47, %48 : vector<8x256xf32>
    %50 = arith.mulf %49, %42 : vector<8x256xf32>
    %cst_19 = arith.constant 0.284496725 : f32
    %51 = vector.broadcast %cst_19 : f32 to vector<8x256xf32>
    %52 = arith.subf %50, %51 : vector<8x256xf32>
    %53 = arith.mulf %52, %42 : vector<8x256xf32>
    %cst_20 = arith.constant 0.254829586 : f32
    %54 = vector.broadcast %cst_20 : f32 to vector<8x256xf32>
    %55 = arith.addf %53, %54 : vector<8x256xf32>
    %56 = arith.mulf %55, %42 : vector<8x256xf32>
    %cst_21 = arith.constant 0.000000e+00 : f32
    %57 = vector.broadcast %cst_21 : f32 to vector<8x256xf32>
    %58 = arith.subf %57, %33 : vector<8x256xf32>
    %59 = arith.mulf %58, %33 : vector<8x256xf32>
    %60 = math.exp %59 : vector<8x256xf32>
    %61 = arith.mulf %56, %60 : vector<8x256xf32>
    %cst_22 = arith.constant 1.000000e+00 : f32
    %62 = vector.broadcast %cst_22 : f32 to vector<8x256xf32>
    %63 = arith.subf %62, %61 : vector<8x256xf32>
    %cst_23 = arith.constant 0.000000e+00 : f32
    %64 = vector.broadcast %cst_23 : f32 to vector<8x256xf32>
    %65 = arith.cmpf olt, %32, %64 : vector<8x256xf32>
    %cst_24 = arith.constant 0.000000e+00 : f32
    %66 = vector.broadcast %cst_24 : f32 to vector<8x256xf32>
    %67 = arith.subf %66, %63 : vector<8x256xf32>
    %68 = arith.select %65, %67, %63 : vector<8x256xi1>, vector<8x256xf32>
    %cst_25 = arith.constant 5.000000e-01 : f32
    %69 = vector.broadcast %cst_25 : f32 to vector<8x256xf32>
    %70 = arith.mulf %69, %30 : vector<8x256xf32>
    %cst_26 = arith.constant 1.000000e+00 : f32
    %71 = vector.broadcast %cst_26 : f32 to vector<8x256xf32>
    %72 = arith.addf %71, %68 : vector<8x256xf32>
    %73 = arith.mulf %70, %72 : vector<8x256xf32>
    %74 = arith.truncf %73 : vector<8x256xf32> to vector<8x256xbf16>
    %c0_27 = arith.constant 0 : index
    %c0_28 = arith.constant 0 : index
    %75 = vector.load %arg7[%c0_27, %c0_28] : memref<256x128xbf16, #tpu.memory_space<vmem>>, vector<256x128xbf16>
    %cst_29 = arith.constant dense<0.000000e+00> : vector<8x128xf32>
    %76 = tpu.matmul %74, %75, %cst_29 {dimension_numbers = #tpu.dot_dimension_numbers<[1], [0], [0], [1], [0, 0, 1, 1], [], []>} : vector<8x256xbf16>, vector<256x128xbf16>, vector<8x128xf32> -> vector<8x128xf32>
    %c0_30 = arith.constant 0 : index
    %c0_31 = arith.constant 0 : index
    %77 = vector.load %arg8[%c0_30, %c0_31] : memref<1x128xf32, #tpu.memory_space<vmem>>, vector<1x128xf32>
    %78 = vector.broadcast %77 : vector<1x128xf32> to vector<8x128xf32>
    %79 = arith.addf %76, %78 : vector<8x128xf32>
    %c0_32 = arith.constant 0 : index
    %c0_33 = arith.constant 0 : index
    %c0_34 = arith.constant 0 : index
    %80 = vector.load %arg9[%c0_32, %c0_33, %c0_34] : memref<1x8x128xf32, #tpu.memory_space<vmem>>, vector<1x8x128xf32>
    %81 = vector.shape_cast %80 : vector<1x8x128xf32> to vector<8x128xf32>
    %82 = vector.shape_cast %79 : vector<8x128xf32> to vector<1x8x128xf32>
    tpu.vector_store %arg9[%c0_32, %c0_33, %c0_34], %82 {strides = array<i32>} : memref<1x8x128xf32, #tpu.memory_space<vmem>>, vector<1x8x128xf32>,
    return
  }
  func.func @transform_0(%arg0: i32, %arg1: i32) -> (i32, i32, i32) {
    %c0_i32 = arith.constant 0 : i32
    %c0_i32_0 = arith.constant 0 : i32
    return %arg0, %arg1, %c0_i32 : i32, i32, i32
  }
  func.func @transform_1(%arg0: i32, %arg1: i32) -> (i32, i32, i32) {
    %c1_i32 = arith.constant 1 : i32
    %0 = arith.muli %arg1, %c1_i32 : i32
    %c1_i32_0 = arith.constant 1 : i32
    %1 = arith.subi %0, %c1_i32_0 : i32
    %c0_i32 = arith.constant 0 : i32
    %2 = arith.maxsi %1, %c0_i32 : i32
    %c0_i32_1 = arith.constant 0 : i32
    %c0_i32_2 = arith.constant 0 : i32
    return %arg0, %2, %c0_i32_1 : i32, i32, i32
  }
  func.func @transform_2(%arg0: i32, %arg1: i32) -> (i32, i32, i32) {
    %c1_i32 = arith.constant 1 : i32
    %0 = arith.addi %arg1, %c1_i32 : i32
    %c1_i32_0 = arith.constant 1 : i32
    %1 = arith.muli %0, %c1_i32_0 : i32
    %c0_i32 = arith.constant 0 : i32
    %2 = arith.minsi %1, %c0_i32 : i32
    %c0_i32_1 = arith.constant 0 : i32
    %c0_i32_2 = arith.constant 0 : i32
    return %arg0, %2, %c0_i32_1 : i32, i32, i32
  }
  func.func @transform_3(%arg0: i32, %arg1: i32) -> (i32, i32) {
    %c0_i32 = arith.constant 0 : i32
    %c0_i32_0 = arith.constant 0 : i32
    %c0_i32_1 = arith.constant 0 : i32
    return %c0_i32, %c0_i32_0 : i32, i32
  }
  func.func @transform_4(%arg0: i32, %arg1: i32) -> (i32, i32) {
    %c0_i32 = arith.constant 0 : i32
    %c0_i32_0 = arith.constant 0 : i32
    %c0_i32_1 = arith.constant 0 : i32
    return %c0_i32, %c0_i32_0 : i32, i32
  }
  func.func @transform_5(%arg0: i32, %arg1: i32) -> (i32, i32) {
    %c0_i32 = arith.constant 0 : i32
    %c0_i32_0 = arith.constant 0 : i32
    %c0_i32_1 = arith.constant 0 : i32
    return %c0_i32, %c0_i32_0 : i32, i32
  }
  func.func @transform_6(%arg0: i32, %arg1: i32) -> (i32, i32) {
    %c0_i32 = arith.constant 0 : i32
    %c0_i32_0 = arith.constant 0 : i32
    %c0_i32_1 = arith.constant 0 : i32
    return %c0_i32, %c0_i32_0 : i32, i32
  }
  func.func @transform_7(%arg0: i32, %arg1: i32) -> (i32, i32, i32) {
    %c0_i32 = arith.constant 0 : i32
    %c0_i32_0 = arith.constant 0 : i32
    return %arg0, %arg1, %c0_i32 : i32, i32, i32
  }
}

</mosaic_0001>

<bundles_post_ra>
// kernel: mixed_conv_ff_forward.1
= control target key start
LH: loop header
LB: loop body
LE: loop exit
PB: predicated region body
PF: predicated region fallthrough
CT: control target
= control target key end

     0   :  { %12 = vsyncpa [#allocation3], 0  ;;  %s1462_s0 = inlined_call_operand.vmem [shape: f32[2,8,32], index: 0, kind: input, shape index: {}, may-alias: {0,1,2}]   ;;  %s1463_s1 = inlined_call_operand.vmem [shape: f32[2,8,32], index: 1, kind: input, shape index: {}, may-alias: {0,1,2}]   ;;  %s1464_s2 = inlined_call_operand.vmem [shape: f32[2,8,32], index: 2, kind: input, shape index: {}, may-alias: {0,1,2}]   ;;  %s1465_s3 = inlined_call_operand.vmem [shape: bf16[96,256], index: 3, kind: input, shape index: {}]   ;;  %s1466_s4 = inlined_call_operand.vmem [shape: f32[1,256], index: 4, kind: input, shape index: {}]   ;;  %s1467_s5 = inlined_call_operand.vmem [shape: bf16[256,128], index: 5, kind: input, shape index: {}]   ;;  %s1468_s6 = inlined_call_operand.vmem [shape: f32[1,128], index: 6, kind: input, shape index: {}]   ;;  %s1469_s7 = inlined_call_operand.hbm [shape: f32[2,8,128], index: 7, kind: output, shape index: {}]  }
   0x1   :  { %14 = vsyncpa [#allocation3 + $0x1], 0  ;;  %s1253_s24 = smov 0   ;;  %s1255_s25 = smov 0  }
   0x2   :  { %s1257_s26 = smov 0   ;;  %s1259_s27 = smov 0  }
   0x3   :  { %s1261_s28 = smov 0   ;;  %s1263_s29 = smov 0  }
   0x4 LB: > { %s960_s30 = sadd.s32 4294967295, %s1207_s29   ;;  %s961_s8 = sadd.s32 4294967294, %s1207_s29   ;;  %s1207_s29 = sphi %s1263_s29, %s20_s29   ;;  %s1203_s28 = sphi %s1261_s28, %s1479_s28   ;;  %s1199_s27 = sphi %s1259_s27, %s1478_s27   ;;  %s1195_s26 = sphi %s1257_s26, %s1477_s26   ;;  %s1191_s25 = sphi %s1255_s25, %s1476_s25   ;;  %s1187_s24 = sphi %s1253_s24, %s1475_s24  }
   0x5   : > { %s32_s9 = sadd.s32 1, %s1203_s28  ;;  %s221_s10 = sadd.s32 1, %s1195_s26 }
   0x6   : > { %p34_p0 = scmp.ge.s32.totalorder %s32_s9, 2  ;;  %p231_p1 = scmp.ne.s32.totalorder %s1195_s26, %s1191_s25 }
   0x7   : > { %p232_p2 = scmp.eq.s32.totalorder %s960_s30, 1  ;;  %p237_p3 = scmp.ne.s32.totalorder %s1191_s25, %s1187_s24 }
   0x8   : > { %s1481_s9 = smov (%p34_p0, %s32_s9), 0  ;;  %p238_p5 = scmp.eq.s32.totalorder %s961_s8, 1 }
   0x9   : > { %1471 = sst [smem:[#allocation5_spill]] %s1481_s9  ;;  %p1293_p4 = por %p232_p2, %p231_p1 }
   0xa   : > { %s216_s12 = ssub.s32 %s1203_s28, %s1481_s9  ;;  %p964_p6 = scmp.ge.s32.totalorder %s1207_s29, 1 }
   0xb   : > { %p219_p7 = scmp.eq.s32.totalorder %s216_s12, 0  ;;  %p1300_p8 = por %p238_p5, %p237_p3 }
   0xc   : > { %p310_p9 = scmp.lt.s32.totalorder %s1207_s29, 3 }
   0xd   : > { %s1306_s14 = scalar_select %p219_p7, %s1195_s26, %s221_s10  }
   0xe   : > { %p311_p10 = pnand %p964_p6, %p310_p9 }
   0xf   : > { %p364_p11 = scmp.lt.s32.totalorder (!%p311_p10), %s1199_s27, 1  ;;  %v1087_v0 = vld [vmem:[%s1465_s3 + $0x4] ss:$8 sps:$4 sm:$0xff] (!%p311_p10)   ;;  %v1089_v1 = vld [vmem:[%s1465_s3] ss:$8 sps:$4 sm:$0xff] (!%p311_p10)   ;;  %vm453_vm0 = vcmask (!%p311_p10), 1040384   ;;  %v494_v54 = vlaneseq (!%p311_p10) }
  0x10   : > { %314 = sbr.rel (%p311_p10) target bundleno = 667 (0x29b), region = 48  ;;  %v1090_v2 = vld [vmem:[%s1465_s3 + $0x14] ss:$8 sps:$4 sm:$0xff] (!%p311_p10)   ;;  %567 = vmatprep.subr.bf16.mxu0 (!%p311_p10), %v1087_v0  ;;  %v1092_v3 = vld [vmem:[%s1465_s3 + $0x10] ss:$8 sps:$4 sm:$0xff] (!%p311_p10)   ;;  %vm457_vm2 = vcmask (!%p311_p10), 1044480  }
  0x11   : > { %568 = vmatpush1.bf16.msra.mxu0 (!%p311_p10), %v1089_v1  ;;  %v1093_v4 = vld [vmem:[%s1465_s3 + $0x24] ss:$8 sps:$4 sm:$0xff] (!%p311_p10)   ;;  %vm454_vm1 = vsmask.f32 (!%p311_p10), 256  ;;  %v1095_v13 = vld [vmem:[%s1465_s3 + $0x20] ss:$8 sps:$4 sm:$0xff] (!%p311_p10)  }
  0x12   : > { %569 = vmatprep.subr.bf16.mxu0 (!%p311_p10), %v1090_v2  ;;  %vm458_vm3 = vsmask.f32 (!%p311_p10), 4352  ;;  %v1096_v15 = vld [vmem:[%s1465_s3 + $0x34] ss:$8 sps:$4 sm:$0xff] (!%p311_p10)   ;;  %v1098_v18 = vld [vmem:[%s1465_s3 + $0x30] ss:$8 sps:$4 sm:$0xff] (!%p311_p10)   ;;  %vm455_vm4 = vmand (!%p311_p10), %vm453_vm0, %vm454_vm1 }
  0x13   : > { %v1099_v20 = vld [vmem:[%s1465_s3 + $0x44] ss:$8 sps:$4 sm:$0xff] (!%p311_p10)   ;;  %vm459_vm5 = vmand (!%p311_p10), %vm457_vm2, %vm458_vm3  ;;  %v1209_v23 = vmov (!%p311_p10), 0   ;;  %v1101_v25 = vld [vmem:[%s1465_s3 + $0x40] ss:$8 sps:$4 sm:$0xff] (!%p311_p10)   ;;  %s1210_s23 = smov (!%p311_p10), 32  }
  0x14   : > { %599 = vmatprep.mubr.bf16.mxu0 (!%p311_p10), %v1209_v23  ;;  %v1102_v29 = vld [vmem:[%s1465_s3 + $0x54] ss:$8 sps:$4 sm:$0xff] (!%p311_p10)   ;;  %v1104_v32 = vld [vmem:[%s1465_s3 + $0x50] ss:$8 sps:$4 sm:$0xff] (!%p311_p10)   ;;  %s1211_s30 = smov (!%p311_p10), 64   ;;  %vm474_vm6 = vcmask (!%p311_p10), 261120  }
  0x15   : > { %570 = vmatpush1.bf16.msra.mxu0 (!%p311_p10), %v1092_v3  ;;  %vm477_vm7 = vcmask (!%p311_p10), 523264   ;;  %vm564_vm8 = vcmask (!%p311_p10), 785408   ;;  %v1105_v38 = vld [vmem:[%s1467_s5 + $0x40] sm:$0xff] (!%p311_p10)   ;;  %v1107_v40 = vld [vmem:[%s1467_s5 + $0x48] sm:$0xff] (!%p311_p10)   ;;  %v1109_v42 = vld [vmem:[%s1467_s5 + $0x50] sm:$0xff] (!%p311_p10)   ;;  %v495_v55 = vshrl.u32 (!%p311_p10), %v494_v54, 7 }
  0x16   : > { %571 = vmatprep.subr.bf16.mxu0 (!%p311_p10), %v1093_v4  ;;  %v1106_v39 = vld [vmem:[%s1467_s5] sm:$0xff] (!%p311_p10)   ;;  %1007 = vmatprep.subr.bf16.mxu1 (!%p311_p10), %v1105_v38  ;;  %v1108_v41 = vld [vmem:[%s1467_s5 + $0x8] sm:$0xff] (!%p311_p10)   ;;  %v1110_v43 = vld [vmem:[%s1467_s5 + $0x10] sm:$0xff] (!%p311_p10)   ;;  %s361_s17 = sand.u32 (!%p311_p10), 1, %s1191_s25  }
  0x17   : > { %s365_s15 = scalar_select %p364_p11, %s1199_s27, 1  ;;  %1008 = vmatpush3.bf16.msra.mxu1 %v1106_v39  ;;  %v1111_v44 = vld [vmem:[%s1467_s5 + $0x58] sm:$0xff]   ;;  %v1113_v46 = vld [vmem:[%s1467_s5 + $0x60] sm:$0xff]   ;;  %v1115_v48 = vld [vmem:[%s1467_s5 + $0x68] sm:$0xff]   ;;  %v496_v56 = vsub.s32 0, %v495_v55  ;;  %v500_v58 = vsub.s32 1, %v495_v55 }
  0x18   : > { %1009 = vmatprep.subr.bf16.mxu1 %v1107_v40  ;;  %v1112_v45 = vld [vmem:[%s1467_s5 + $0x18] sm:$0xff]   ;;  %v1114_v47 = vld [vmem:[%s1467_s5 + $0x20] sm:$0xff]   ;;  %v1116_v49 = vld [vmem:[%s1467_s5 + $0x28] sm:$0xff]   ;;  %s965_s18 = sshll.u32 %s361_s17, 3 }
  0x19   : > { %s966_s22 = sshll.u32 %s365_s15, 3  ;;  %572 = vmatpush1.bf16.msra.mxu0 %v1095_v13  ;;  %v1117_v50 = vld [vmem:[%s1467_s5 + $0x70] sm:$0xff]   ;;  %v1119_v52 = vld [vmem:[%s1467_s5 + $0x78] sm:$0xff]   ;;  %v492_v57 = vld [vmem:[%s1466_s4] sm:$0x3]  ;;  %s1004_s15 = sshll.u32 %s1199_s27, 7 }
  0x1a   : > { %s370_s8 = scalar_lea.vmem %s1462_s0, %s966_s22  ;;  %s380_s9 = scalar_lea.vmem %s1463_s1, %s966_s22  ;;  %573 = vmatprep.subr.bf16.mxu0 %v1096_v15  ;;  %v1118_v51 = vld [vmem:[%s1467_s5 + $0x30] sm:$0xff]   ;;  %v1120_v53 = vld [vmem:[%s1467_s5 + $0x38] sm:$0xff]   ;;  %v497_v59 = vrot.slane %v492_v57, %v496_v56  ;;  %v501_v60 = vrot.slane %v492_v57, %v500_v58 }
  0x1b   : > { %s393_s21 = scalar_lea.vmem %s1464_s2, %s966_s22  ;;  %v398_v5 = vld [vmem:[%s370_s8] sm:$0xff]  ;;  %1010 = vmatpush3.bf16.msra.mxu1 %v1108_v41  ;;  %s845_s8 = scalar_lea.sflag [#allocation3], %s361_s17 }
  0x1c   : > { %v426_v6 = vld [vmem:[%s380_s9 + $0x7] sm:$0x1]  ;;  %v399_v7 = vpack.c.bf16 %v398_v5, %v398_v5  ;;  %v433_v9 = vld [vmem:[%s393_s21] sm:$0x1]  ;;  %1011 = vmatprep.subr.bf16.mxu1 %v1109_v42  ;;  %s363_s21 = scalar_lea.vmem [#allocation2], %s965_s18  ;;  %s1415_s9 = scalar_lea.hbm %s1469_s7, %s1004_s15 }
  0x1d   : > { %v427_v8 = vpack.c.bf16 %v426_v6, %v426_v6  ;;  %v434_v10 = vpack.c.bf16 %v433_v9, %v433_v9  ;;  %574 = vmatpush1.bf16.msra.mxu0 %v1098_v18  ;;  %s1212_s27 = smov [#allocation2]  }
  0x1e   : > { %v441_v11 = vshrl.u32 %v399_v7, 16  ;;  %v444_v12 = vshll.u32 %v399_v7, 16  ;;  %575 = vmatprep.subr.bf16.mxu0 %v1099_v20  ;;  %s1133_s12 = sshll.u32 %s1212_s27, 4  ;;  %s1134_s12 = int_to_ptr.vmem [resolvable:$false] %s1133_s12 }
  0x1f   : > { %v439_v14 = vmul.bf16 0.0, %v434_v10  ;;  %v432_v16 = vmul.bf16 0.0, %v427_v8  ;;  %1012 = vmatpush3.bf16.msra.mxu1 %v1110_v43  ;;  %s1135_s16 = scalar_lea.vmem %s1134_s12, 256 }
  0x20   : > { %v443_v17 = vrot.slane %v441_v11, 7  ;;  %1013 = vmatprep.subr.bf16.mxu1 %v1111_v44 }
  0x21   : > { %v449_v19 = vshll.u32 %v439_v14, 16  ;;  %576 = vmatpush1.bf16.msra.mxu0 %v1101_v25 }
  0x22   : > { %v446_v21 = vor.u32 %v444_v12, %v443_v17  ;;  %577 = vmatprep.subr.bf16.mxu0 %v1102_v29 }
  0x23   : > { %v451_v22 = vrot.slane %v449_v19, 4  ;;  %1014 = vmatpush3.bf16.msra.mxu1 %v1112_v45 }
  0x24   : > { %v456_v24 = vsel %vm455_vm4, %v432_v16, %v446_v21  ;;  %1015 = vmatprep.subr.bf16.mxu1 %v1113_v46 }
  0x25   : > { %v460_v26 = vsel %vm459_vm5, %v456_v24, %v451_v22  ;;  %578 = vmatpush1.bf16.msra.mxu0 %v1104_v32 }
  0x26   : > { %v462_v27 = vshrl.u32 %v460_v26, 16  ;;  %v464_v28 = vshll.u32 %v460_v26, 16  ;;  %v471_v31 = vrot.slane %v460_v26, 1 }
  0x27   : > { %1016 = vmatpush3.bf16.msra.mxu1 %v1114_v47 }
  0x28   : > { %v466_v30 = vrot.slane %v464_v28, 1  ;;  %1017 = vmatprep.subr.bf16.mxu1 %v1115_v48 }
  0x2a   : > { %v467_v33 = vor.u32 %v466_v30, %v462_v27 }
  0x2b   : > { %1018 = vmatpush3.bf16.msra.mxu1 %v1116_v49 }
  0x2c   : > { %468 = vrot.lane.b32.xlu0 %v467_v33, %s1210_s23  ;;  %1019 = vmatprep.subr.bf16.mxu1 %v1117_v50  ;;  %s859_s23 = sshll.u32 %s363_s21, 4  ;;  %s1417_s23 = int_to_ptr.vmem [resolvable:$true] %s859_s23 }
  0x2d   : > { %s1129_s10 = scalar_lea.vmem %s1417_s23, 128  ;;  %p1136_p1 = scmp.lt.s32.totalorder %s1417_s23, %s1134_s12 }
  0x2e   : > { %p1130_p12 = scmp.ne.s32.totalorder %s1417_s23, %s1129_s10  ;;  %p1137_p2 = scmp.lt.s32.totalorder %s1135_s16, %s1129_s10 }
  0x2f   : > { %1020 = vmatpush3.bf16.msra.mxu1 %v1118_v51 }
  0x30   : > { %472 = vrot.lane.b32.xlu0 %v471_v31, %s1211_s30  ;;  %1021 = vmatprep.subr.bf16.mxu1 %v1119_v52  ;;  %p1131_p13 = pnand %p1130_p12, %p1293_p4  ;;  %p1138_p3 = por %p1137_p2, %p1136_p1 }
  0x32   : > { %p1132_p0 = pneg %p1131_p13 }
  0x33   : > { %1022 = vmatpush3.bf16.msra.mxu1 %v1120_v53 }
  0x34   : > { %p1139_p5 = pnand %p1138_p3, %p1132_p0 }
  0x9e   : > { %v469_v34 = vpop.permute.xlu0 %468 }
  0x9f   : > { %v476_v35 = vsel %vm474_vm6, %v460_v26, %v469_v34 }
  0xa2   : > { %v473_v36 = vpop.permute.xlu0 %472 }
  0xa3   : > { %v479_v37 = vsel %vm477_vm7, %v476_v35, %v473_v36 }
  0xa4   : > { %981 = vmatmul.mubr.msk.bf16.vlgmr.msra.gmra.mrb[0].mxu0 %vm564_vm8, %v479_v37 }
 0x177   : > { %v601_v61 = vpop.f32.mrb[0].mxu0 }
 0x178   : > { %v602_v62 = vadd.f32 %v601_v61, %v497_v59  ;;  %v603_v63 = vpop.f32.mrb[1].mxu0 }
 0x179   : > { %v604_v0 = vadd.f32 %v603_v63, %v501_v60  ;;  %v605_v1 = vpop.f32.mrb[2].mxu0  ;;  %v986_v63 = vld [vmem:[%s1468_s6] ss:$0 sm:$0xff] }
 0x17a   : > { %v608_v2 = vmul.f32 0.70710677, %v602_v62  ;;  %v606_v3 = vpop.f32.mrb[3].mxu0  ;;  %v660_v52 = vmul.f32 0.5, %v602_v62 }
 0x17b   : > { %v609_v4 = vmul.f32 0.70710677, %v604_v0  ;;  %v661_v55 = vmul.f32 0.5, %v604_v0 }
 0x17c   : > { %v610_v5 = vand.u32 2147483647, %v608_v2  ;;  %vm654_vm9 = vcmp.lt.f32.partialorder %v608_v2, 0.0 }
 0x17d   : > { %v611_v6 = vand.u32 2147483647, %v609_v4  ;;  %vm655_vm10 = vcmp.lt.f32.partialorder %v609_v4, 0.0 }
 0x17e   : > { %v612_v7 = vmul.f32 0.3275911, %v610_v5  ;;  %v642_v14 = vsub.f32 0.0, %v610_v5 }
 0x17f   : > { %v613_v8 = vmul.f32 0.3275911, %v611_v6  ;;  %v643_v17 = vsub.f32 0.0, %v611_v6 }
 0x180   : > { %v614_v9 = vadd.f32 1.0, %v612_v7  ;;  %v644_v20 = vmul.f32 %v642_v14, %v610_v5 }
 0x181   : > { %v615_v10 = vadd.f32 1.0, %v613_v8  ;;  %v645_v22 = vmul.f32 %v643_v17, %v611_v6 }
 0x182   : > { %1121 = vrcp.f32 %v614_v9  ;;  %v646_v26 = vmul.f32 1.442695, %v644_v20 }
 0x183   : > { %1123 = vrcp.f32 %v615_v10  ;;  %v648_v28 = vmul.f32 1.442695, %v645_v22 }
 0x184   : > { %1125 = vpow2.f32 %v646_v26 }
 0x185   : > { %1127 = vpow2.f32 %v648_v28 }
 0x18c   : > { %v1122_v11 = vpop.eup %1121 }
 0x18d   : > { %v1124_v12 = vpop.eup %1123  ;;  %v618_v13 = vmul.f32 %v1122_v11, %v614_v9 }
 0x18e   : > { %v619_v15 = vmul.f32 %v1124_v12, %v615_v10  ;;  %v1126_v42 = vpop.eup %1125 }
 0x18f   : > { %v620_v16 = vsub.f32 2.0, %v618_v13  ;;  %v1128_v44 = vpop.eup %1127 }
 0x190   : > { %v621_v18 = vsub.f32 2.0, %v619_v15 }
 0x191   : > { %v622_v19 = vmul.f32 %v1122_v11, %v620_v16 }
 0x192   : > { %v623_v21 = vmul.f32 %v1124_v12, %v621_v18 }
 0x193   : > { %v624_v23 = vmul.f32 1.0614054, %v622_v19 }
 0x194   : > { %v625_v24 = vmul.f32 1.0614054, %v623_v21 }
 0x195   : > { %v982_v25 = vadd.f32 -1.4531521, %v624_v23 }
 0x196   : > { %v983_v27 = vadd.f32 -1.4531521, %v625_v24 }
 0x197   : > { %v628_v29 = vmul.f32 %v982_v25, %v622_v19 }
 0x198   : > { %v629_v30 = vmul.f32 %v983_v27, %v623_v21 }
 0x199   : > { %v630_v31 = vadd.f32 1.4214138, %v628_v29 }
 0x19a   : > { %v631_v32 = vadd.f32 1.4214138, %v629_v30 }
 0x19b   : > { %v632_v33 = vmul.f32 %v630_v31, %v622_v19 }
 0x19c   : > { %v633_v34 = vmul.f32 %v631_v32, %v623_v21 }
 0x19d   : > { %v984_v35 = vadd.f32 -0.28449672, %v632_v33 }
 0x19e   : > { %v985_v36 = vadd.f32 -0.28449672, %v633_v34 }
 0x19f   : > { %v636_v37 = vmul.f32 %v984_v35, %v622_v19 }
 0x1a0   : > { %v637_v38 = vmul.f32 %v985_v36, %v623_v21 }
 0x1a1   : > { %v638_v39 = vadd.f32 0.2548296, %v636_v37 }
 0x1a2   : > { %v639_v40 = vadd.f32 0.2548296, %v637_v38 }
 0x1a3   : > { %v640_v41 = vmul.f32 %v638_v39, %v622_v19 }
 0x1a4   : > { %v641_v43 = vmul.f32 %v639_v40, %v623_v21 }
 0x1a5   : > { %v650_v45 = vmul.f32 %v1126_v42, %v640_v41 }
 0x1a6   : > { %v651_v46 = vmul.f32 %v1128_v44, %v641_v43 }
 0x1a7   : > { %v652_v47 = vsub.f32 1.0, %v650_v45 }
 0x1a8   : > { %v653_v48 = vsub.f32 1.0, %v651_v46 }
 0x1a9   : > { %v656_v49 = vsub.f32 0.0, %v652_v47 }
 0x1aa   : > { %v657_v50 = vsub.f32 0.0, %v653_v48 }
 0x1ab   : > { %v658_v51 = vsel %vm654_vm9, %v656_v49, %v652_v47 }
 0x1ac   : > { %v659_v53 = vsel %vm655_vm10, %v657_v50, %v653_v48  ;;  %v662_v54 = vadd.f32 1.0, %v658_v51 }
 0x1ad   : > { %v663_v56 = vadd.f32 1.0, %v659_v53 }
 0x1ae   : > { %v664_v57 = vmul.f32 %v662_v54, %v660_v52 }
 0x1af   : > { %v665_v58 = vmul.f32 %v663_v56, %v661_v55 }
 0x1b0   : > { %v666_v60 = vpack.c.bf16 %v664_v57, %v664_v57 }
 0x1b1   : > { %v667_v59 = vpack.c.bf16 %v665_v58, %v665_v58 }
 0x1b3   : > { %835 = vmatprep.mubr.bf16.mxu1 %v667_v59 }
 0x1b4   : > { %836 = vmatmul.mubr.bf16.vlgmr.msra.gmra.mrb[0].mxu1 %v666_v60 }
 0x287   : > { %v1023_v61 = vpop.f32.mrb[0].mxu1 }
 0x288   : > { %v1024_v62 = vpop.f32.mrb[1].mxu1 }
 0x289   : > { %v1025_v0 = vadd.f32 %v1024_v62, %v1023_v61  ;;  %v1026_v1 = vpop.f32.mrb[2].mxu1 }
 0x28a   : > { %v1027_v2 = vpop.f32.mrb[3].mxu1 }
 0x28b   : > { %v838_v3 = vadd.f32 %v1025_v0, %v986_v63 }
 0x28d   : > { %843 = vst [vmem:[%s363_s21] sm:$0xff] %v838_v3 }
 0x28e   : > { %1142 = shalt.err (!%p1139_p5)
}
 0x28f   : > { %s1143_s17 = scalar_lea.hbm %s1415_s9, 128  ;;  %s1147_s20 = scalar_lea.hbm %s1469_s7, 256 }
 0x290   : > { %p1144_p6 = scmp.ne.s32.totalorder %s1415_s9, %s1143_s17  ;;  %p1148_p10 = scmp.lt.u32.totalorder %s1415_s9, %s1469_s7 }
 0x291   : > { %p1149_p11 = scmp.lt.u32.totalorder %s1147_s20, %s1143_s17  ;;  %p1151_p13 = scmp.lt.u32.totalorder %s1143_s17, %s1415_s9 }
 0x292   : > { %p1145_p7 = pnand %p1144_p6, %p1293_p4 }
 0x293   : > { %p1150_p12 = por %p1149_p11, %p1148_p10 }
 0x294   : > { %p1146_p9 = pneg %p1145_p7 }
 0x295   : > { %p1152_p0 = por %p1151_p13, %p1150_p12 }
 0x297   : > { %p1153_p1 = pnand %p1152_p0, %p1146_p9 }
 0x299   : > { %1156 = shalt.err (!%p1153_p1)
}
 0x29a   : > { %1029 = dma.vmem_to_hbm [thread:$0]  (%p1293_p4), %s1417_s23, 128, %s1415_s9, %s845_s8  }
 0x29b PF: > { %p1035_p2 = scmp.ge.s32.totalorder %s1207_s29, 2  ;;  %s871_s30 = sand.u32 1, %s1187_s24  }
 0x29c   : > { %s872_s22 = scalar_lea.sflag [#allocation3], %s871_s30 }
 0x29d   : > { %p1032_p3 = pnand %p1035_p2, %p1300_p8 }
 0x29f   : > { %1182 = dma.done.wait (!%p1032_p3), %s872_s22, 128  }
 0x2a0   : > { %1184 = vsyncadd (!%p1032_p3), %s872_s22, 4294967168  ;;  %s20_s29 = sadd.s32 1, %s1207_s29   ;;  %s1474_s11 = sld [smem:[#allocation5_spill]] }
 0x2a1   : > { %p17_p5 = scmp.ge.s32.totalorder %s20_s29, 4   ;;  %s1475_s24 = smov %s1191_s25 }
 0x2a2   : > { %s1476_s25 = smov %s1195_s26  ;;  %s1477_s26 = smov %s1306_s14 }
 0x2a3   : > { %s1478_s27 = smov %s1203_s28  ;;  %19 = sbr.rel (!%p17_p5) target bundleno = 4 (0x4), region = 89 }
 0x2a6   : > { %s1479_s28 = smov %s1474_s11 }
 0x2aa   :  { %877 = vsyncpa [#allocation3], 1 }
 0x2ab   :  { %879 = vsyncpa [#allocation3 + $0x1], 1 }

</bundles_post_ra>
